<compile_context>
chip_gen: v5e
topology: v5e:2x2
jax: 0.10.0
libtpu: 0.0.40
codegen_flags: <defaults>
</compile_context>

<pallas_src>
import functools

import jax
import jax.numpy as jnp
from jax.experimental import pallas as pl
from jax.experimental.pallas import tpu as pltpu


def _adaptive_threshold_kernel(x_ref, w1a_ref, w1m_ref, b1_ref, w2_ref, b2_ref,
                               o_ref, sum_scr, max_scr, *,
                               hw_total, t_hw, tb, c):
    k = pl.program_id(1)
    nk = pl.num_programs(1)

    # ---- init accumulators at the start of every spatial sweep ----------------
    @pl.when(k == 0)
    def _init():
        sum_scr[...] = jnp.zeros_like(sum_scr)
        max_scr[...] = jnp.full_like(max_scr, -jnp.inf)

    # ---- streaming reduction over this spatial tile ---------------------------
    x = x_ref[...].astype(jnp.float32)                       # (tb*c, t_hw)

    if hw_total % t_hw != 0:
        # mask the padded tail of the last spatial tile
        col = jax.lax.broadcasted_iota(jnp.int32, x.shape, 1) + k * t_hw
        valid = col < hw_total
        x_sum = jnp.where(valid, x, 0.0)
        x_max = jnp.where(valid, x, -jnp.inf)
    else:
        x_sum = x
        x_max = x

    sum_scr[...] = sum_scr[...] + jnp.sum(x_sum, axis=-1, keepdims=True)
    max_scr[...] = jnp.maximum(max_scr[...],
                               jnp.max(x_max, axis=-1, keepdims=True))

    # ---- epilogue: tiny MLP + sigmoid, once per batch tile --------------------
    @pl.when(k == nk - 1)
    def _finalize():
        inv_hw = 1.0 / float(hw_total)
        for t in range(tb):                                   # static, tb small
            avg_t = sum_scr[t * c:(t + 1) * c, :] * inv_hw    # (c, 1)
            max_t = max_scr[t * c:(t + 1) * c, :]             # (c, 1)
            h = (jnp.dot(w1a_ref[...], avg_t,
                         preferred_element_type=jnp.float32)
                 + jnp.dot(w1m_ref[...], max_t,
                           preferred_element_type=jnp.float32)
                 + b1_ref[...])                               # (mid, 1)
            h = jnp.maximum(h, 0.0)                           # ReLU
            logit = (jnp.dot(w2_ref[...], h,
                             preferred_element_type=jnp.float32)
                     + b2_ref[...])                           # (1, 1)
            o_ref[t:t + 1, :] = jax.nn.sigmoid(logit).astype(o_ref.dtype)


def _pick_spatial_tile(rows, hw, itemsize, max_block_bytes=8 * 1024 * 1024):
    """Largest lane tile (multiple of 128) so a double-buffered input block
    stays well inside the VMEM limit on all generations (incl. v7x 64 MiB)."""
    t = (max_block_bytes // max(rows * itemsize, 1)) // 128 * 128
    t = max(t, 128)
    return hw if hw <= t else t


@functools.partial(jax.jit, static_argnames=("t_hw",))
def adaptive_threshold(x, w1, b1, w2, b2, *, t_hw=None):
    """x: (B, C, H, W). Weights in torch.nn.Linear layout:
       w1: (mid, 2C), b1: (mid,), w2: (1, mid), b2: (1,)."""
    B, C, H, W = x.shape
    mid = w1.shape[0]
    hw = H * W

    # Fold channels into the sublane axis; spatial on the lane axis.
    x_flat = x.reshape(B * C, hw)

    # Batch tiling: rows per block must be a multiple of 8 or cover the array.
    tb = 8 if B % 8 == 0 else B
    rows = tb * C

    if t_hw is None:
        t_hw = _pick_spatial_tile(rows, hw, x.dtype.itemsize)

    num_b = B // tb
    num_k = pl.cdiv(hw, t_hw)

    # Split first-layer weight along the concat axis: feat@W1.T == avg part + max part.
    w1a = w1[:, :C]                     # (mid, C)
    w1m = w1[:, C:]                     # (mid, C)
    b1c = b1.reshape(mid, 1)            # (mid, 1)
    w2r = w2.reshape(1, mid)            # (1, mid)
    b2c = b2.reshape(1, 1)              # (1, 1)

    kernel = functools.partial(_adaptive_threshold_kernel,
                               hw_total=hw, t_hw=t_hw, tb=tb, c=C)

    const = lambda b, k: (0, 0)         # params resident: DMA'd once

    out = pl.pallas_call(
        kernel,
        out_shape=jax.ShapeDtypeStruct((B, 1), jnp.float32),
        grid_spec=pltpu.PrefetchScalarGridSpec(
            num_scalar_prefetch=0,
            grid=(num_b, num_k),
            in_specs=[
                pl.BlockSpec((rows, t_hw), lambda b, k: (b, k)),
                pl.BlockSpec((mid, C), const),
                pl.BlockSpec((mid, C), const),
                pl.BlockSpec((mid, 1), const),
                pl.BlockSpec((1, mid), const),
                pl.BlockSpec((1, 1), const),
            ],
            out_specs=pl.BlockSpec((tb, 1), lambda b, k: (b, 0)),
            scratch_shapes=[
                pltpu.VMEM((rows, 1), jnp.float32),   # running sum
                pltpu.VMEM((rows, 1), jnp.float32),   # running max
            ],
        ),
        compiler_params=pltpu.CompilerParams(
            dimension_semantics=("parallel", "arbitrary"),
            vmem_limit_bytes=48 * 1024 * 1024,
        ),
    )(x_flat, w1a, w1m, b1c, w2r, b2c)

    return out.reshape(B, 1, 1, 1).astype(x.dtype)


def _reference(x, w1, b1, w2, b2):
    """Pure-JAX reference matching the PyTorch forward."""
    B = x.shape[0]
    avg_out = jnp.mean(x, axis=(2, 3))
    max_out = jnp.max(x, axis=(2, 3))
    feat = jnp.concatenate([avg_out, max_out], axis=1)
    h = jnp.maximum(feat @ w1.T + b1, 0.0)
    logit = h @ w2.T + b2
    return jax.nn.sigmoid(logit).reshape(B, 1, 1, 1)


if __name__ == "__main__":
    key = jax.random.PRNGKey(0)
    k1, k2, k3, k4, kx = jax.random.split(key, 5)

    C = 4
    reduction = 16
    mid = max(C // reduction, 8)        # = 8

    # Deterministic synthetic parameters (torch.nn.Linear layout).
    w1 = jax.random.normal(k1, (mid, 2 * C), dtype=jnp.float32) * 0.1
    b1 = jax.random.normal(k2, (mid,), dtype=jnp.float32) * 0.1
    w2 = jax.random.normal(k3, (1, mid), dtype=jnp.float32) * 0.1
    b2 = jax.random.normal(k4, (1,), dtype=jnp.float32) * 0.1

    def check(x, t_hw, atol):
        thr = adaptive_threshold(x, w1, b1, w2, b2, t_hw=t_hw)
        thr = jax.block_until_ready(thr)
        ref = _reference(x.astype(jnp.float32), w1, b1, w2, b2)
        assert thr.shape == (x.shape[0], 1, 1, 1), thr.shape
        assert jnp.allclose(thr.astype(jnp.float32), ref, atol=atol, rtol=1e-4), (thr, ref)

    # 1) default tile plan (single spatial tile at this size)
    x = jax.random.normal(kx, (2, C, 16, 16), dtype=jnp.float32)
    check(x, None, 1e-5)

    # 2) forced spatial tiling -> exercises accumulate-across-grid-steps path
    check(x, 128, 1e-5)

    # 3) spatial size not divisible by the tile -> exercises tail masking
    x_odd = jax.random.normal(kx, (2, C, 17, 17), dtype=jnp.float32)
    check(x_odd, 128, 1e-5)

    # 4) bf16 activations (halves HBM traffic; accumulation stays f32 in-kernel)
    check(x.astype(jnp.bfloat16), 128, 2e-2)

    print("KERNEL_OK")
</pallas_src>

<mosaic_0001>
module attributes {stable_mosaic.version = 11 : i64} {
  func.func @_adaptive_threshold_kernel(%arg0: i32, %arg1: i32, %arg2: memref<8x256xf32, #tpu.memory_space<vmem>>, %arg3: memref<8x4xf32, #tpu.memory_space<vmem>>, %arg4: memref<8x4xf32, #tpu.memory_space<vmem>>, %arg5: memref<8x1xf32, #tpu.memory_space<vmem>>, %arg6: memref<1x8xf32, #tpu.memory_space<vmem>>, %arg7: memref<1x1xf32, #tpu.memory_space<vmem>>, %arg8: memref<2x1xf32, #tpu.memory_space<vmem>>, %arg9: memref<8x1xf32, #tpu.memory_space<vmem>>, %arg10: memref<8x1xf32, #tpu.memory_space<vmem>>) attributes {dimension_semantics = [#tpu.dimension_semantics<parallel>, #tpu.dimension_semantics<arbitrary>], iteration_bounds = array<i64: 1, 1>, scalar_prefetch = 0 : i64, scratch_operands = 2 : i64, tpu.core_type = #tpu.core_type<tc>, window_params = [{transform_indices = @transform_0, window_bounds = array<i64: 8, 256>}, {pipeline_mode = #tpu.pipeline_mode<synchronous>, transform_indices = @transform_1, window_bounds = array<i64: 8, 4>}, {pipeline_mode = #tpu.pipeline_mode<synchronous>, transform_indices = @transform_2, window_bounds = array<i64: 8, 4>}, {pipeline_mode = #tpu.pipeline_mode<synchronous>, transform_indices = @transform_3, window_bounds = array<i64: 8, 1>}, {pipeline_mode = #tpu.pipeline_mode<synchronous>, transform_indices = @transform_4, window_bounds = array<i64: 1, 8>}, {pipeline_mode = #tpu.pipeline_mode<synchronous>, transform_indices = @transform_5, window_bounds = array<i64: 1, 1>}, {transform_indices = @transform_6, window_bounds = array<i64: 2, 1>}]} {
    %c0_i32 = arith.constant 0 : i32
    %0 = arith.cmpi eq, %arg1, %c0_i32 : i32
    %1 = arith.extui %0 : i1 to i32
    %c0_i32_0 = arith.constant 0 : i32
    %2 = arith.cmpi ne, %1, %c0_i32_0 : i32
    scf.if %2 {
      %cst_13 = arith.constant 0.000000e+00 : f32
      %17 = vector.broadcast %cst_13 : f32 to vector<8x1xf32>
      %c0_14 = arith.constant 0 : index
      %c0_15 = arith.constant 0 : index
      %18 = vector.load %arg9[%c0_14, %c0_15] : memref<8x1xf32, #tpu.memory_space<vmem>>, vector<8x1xf32>
      tpu.vector_store %arg9[%c0_14, %c0_15], %17 {strides = array<i32>} : memref<8x1xf32, #tpu.memory_space<vmem>>, vector<8x1xf32>,
      %cst_16 = arith.constant 0xFF800000 : f32
      %19 = vector.broadcast %cst_16 : f32 to vector<8x1xf32>
      %c0_17 = arith.constant 0 : index
      %c0_18 = arith.constant 0 : index
      %20 = vector.load %arg10[%c0_17, %c0_18] : memref<8x1xf32, #tpu.memory_space<vmem>>, vector<8x1xf32>
      tpu.vector_store %arg10[%c0_17, %c0_18], %19 {strides = array<i32>} : memref<8x1xf32, #tpu.memory_space<vmem>>, vector<8x1xf32>,
    } else {
    }
    %c0 = arith.constant 0 : index
    %c0_1 = arith.constant 0 : index
    %3 = vector.load %arg2[%c0, %c0_1] : memref<8x256xf32, #tpu.memory_space<vmem>>, vector<8x256xf32>
    %c0_2 = arith.constant 0 : index
    %c0_3 = arith.constant 0 : index
    %4 = vector.load %arg9[%c0_2, %c0_3] : memref<8x1xf32, #tpu.memory_space<vmem>>, vector<8x1xf32>
    %cst = arith.constant dense<0.000000e+00> : vector<8xf32>
    %5 = vector.multi_reduction <add>, %3, %cst [1] : vector<8x256xf32> to vector<8xf32>
    %6 = vector.shape_cast %5 : vector<8xf32> to vector<8x1xf32>
    %7 = arith.addf %4, %6 : vector<8x1xf32>
    %c0_4 = arith.constant 0 : index
    %c0_5 = arith.constant 0 : index
    %8 = vector.load %arg9[%c0_4, %c0_5] : memref<8x1xf32, #tpu.memory_space<vmem>>, vector<8x1xf32>
    tpu.vector_store %arg9[%c0_4, %c0_5], %7 {strides = array<i32>} : memref<8x1xf32, #tpu.memory_space<vmem>>, vector<8x1xf32>,
    %c0_6 = arith.constant 0 : index
    %c0_7 = arith.constant 0 : index
    %9 = vector.load %arg10[%c0_6, %c0_7] : memref<8x1xf32, #tpu.memory_space<vmem>>, vector<8x1xf32>
    %cst_8 = arith.constant dense<0xFF800000> : vector<8xf32>
    %10 = vector.multi_reduction <maximumf>, %3, %cst_8 [1] : vector<8x256xf32> to vector<8xf32>
    %11 = vector.shape_cast %10 : vector<8xf32> to vector<8x1xf32>
    %12 = arith.maximumf %9, %11 : vector<8x1xf32>
    %c0_9 = arith.constant 0 : index
    %c0_10 = arith.constant 0 : index
    %13 = vector.load %arg10[%c0_9, %c0_10] : memref<8x1xf32, #tpu.memory_space<vmem>>, vector<8x1xf32>
    tpu.vector_store %arg10[%c0_9, %c0_10], %12 {strides = array<i32>} : memref<8x1xf32, #tpu.memory_space<vmem>>, vector<8x1xf32>,
    %c0_i32_11 = arith.constant 0 : i32
    %14 = arith.cmpi eq, %arg1, %c0_i32_11 : i32
    %15 = arith.extui %14 : i1 to i32
    %c0_i32_12 = arith.constant 0 : i32
    %16 = arith.cmpi ne, %15, %c0_i32_12 : i32
    scf.if %16 {
      %c0_13 = arith.constant 0 : index
      %c0_14 = arith.constant 0 : index
      %17 = vector.load %arg9[%c0_13, %c0_14] : memref<8x1xf32, #tpu.memory_space<vmem>>, vector<4x1xf32>
      %cst_15 = arith.constant 3.906250e-03 : f32
      %18 = vector.broadcast %cst_15 : f32 to vector<4x1xf32>
      %19 = arith.mulf %17, %18 : vector<4x1xf32>
      %c0_16 = arith.constant 0 : index
      %c0_17 = arith.constant 0 : index
      %20 = vector.load %arg10[%c0_16, %c0_17] : memref<8x1xf32, #tpu.memory_space<vmem>>, vector<4x1xf32>
      %c0_18 = arith.constant 0 : index
      %c0_19 = arith.constant 0 : index
      %21 = vector.load %arg3[%c0_18, %c0_19] : memref<8x4xf32, #tpu.memory_space<vmem>>, vector<8x4xf32>
      %cst_20 = arith.constant dense<0.000000e+00> : vector<8x1xf32>
      %22 = tpu.matmul %21, %19, %cst_20 {dimension_numbers = #tpu.dot_dimension_numbers<[1], [0], [0], [1], [0, 0, 1, 1], [], []>} : vector<8x4xf32>, vector<4x1xf32>, vector<8x1xf32> -> vector<8x1xf32>
      %c0_21 = arith.constant 0 : index
      %c0_22 = arith.constant 0 : index
      %23 = vector.load %arg4[%c0_21, %c0_22] : memref<8x4xf32, #tpu.memory_space<vmem>>, vector<8x4xf32>
      %cst_23 = arith.constant dense<0.000000e+00> : vector<8x1xf32>
      %24 = tpu.matmul %23, %20, %cst_23 {dimension_numbers = #tpu.dot_dimension_numbers<[1], [0], [0], [1], [0, 0, 1, 1], [], []>} : vector<8x4xf32>, vector<4x1xf32>, vector<8x1xf32> -> vector<8x1xf32>
      %25 = arith.addf %22, %24 : vector<8x1xf32>
      %c0_24 = arith.constant 0 : index
      %c0_25 = arith.constant 0 : index
      %26 = vector.load %arg5[%c0_24, %c0_25] : memref<8x1xf32, #tpu.memory_space<vmem>>, vector<8x1xf32>
      %27 = arith.addf %25, %26 : vector<8x1xf32>
      %cst_26 = arith.constant 0.000000e+00 : f32
      %28 = vector.broadcast %cst_26 : f32 to vector<8x1xf32>
      %29 = arith.maximumf %27, %28 : vector<8x1xf32>
      %c0_27 = arith.constant 0 : index
      %c0_28 = arith.constant 0 : index
      %30 = vector.load %arg6[%c0_27, %c0_28] : memref<1x8xf32, #tpu.memory_space<vmem>>, vector<1x8xf32>
      %cst_29 = arith.constant dense<0.000000e+00> : vector<1x1xf32>
      %31 = tpu.matmul %30, %29, %cst_29 {dimension_numbers = #tpu.dot_dimension_numbers<[1], [0], [0], [1], [0, 0, 1, 1], [], []>} : vector<1x8xf32>, vector<8x1xf32>, vector<1x1xf32> -> vector<1x1xf32>
      %c0_30 = arith.constant 0 : index
      %c0_31 = arith.constant 0 : index
      %32 = vector.load %arg7[%c0_30, %c0_31] : memref<1x1xf32, #tpu.memory_space<vmem>>, vector<1x1xf32>
      %33 = arith.addf %31, %32 : vector<1x1xf32>
      %34 = arith.negf %33 : vector<1x1xf32>
      %35 = math.exp %34 : vector<1x1xf32>
      %cst_32 = arith.constant 1.000000e+00 : f32
      %36 = vector.broadcast %cst_32 : f32 to vector<1x1xf32>
      %37 = arith.addf %36, %35 : vector<1x1xf32>
      %38 = arith.divf %36, %37 : vector<1x1xf32>
      %c0_33 = arith.constant 0 : index
      %c0_34 = arith.constant 0 : index
      %39 = vector.load %arg8[%c0_33, %c0_34] : memref<2x1xf32, #tpu.memory_space<vmem>>, vector<1x1xf32>
      tpu.vector_store %arg8[%c0_33, %c0_34], %38 {strides = array<i32>} : memref<2x1xf32, #tpu.memory_space<vmem>>, vector<1x1xf32>,
      %c4 = arith.constant 4 : index
      %c0_35 = arith.constant 0 : index
      %40 = vector.load %arg9[%c4, %c0_35] : memref<8x1xf32, #tpu.memory_space<vmem>>, vector<4x1xf32>
      %cst_36 = arith.constant 3.906250e-03 : f32
      %41 = vector.broadcast %cst_36 : f32 to vector<4x1xf32>
      %42 = arith.mulf %40, %41 : vector<4x1xf32>
      %c4_37 = arith.constant 4 : index
      %c0_38 = arith.constant 0 : index
      %43 = vector.load %arg10[%c4_37, %c0_38] : memref<8x1xf32, #tpu.memory_space<vmem>>, vector<4x1xf32>
      %c0_39 = arith.constant 0 : index
      %c0_40 = arith.constant 0 : index
      %44 = vector.load %arg3[%c0_39, %c0_40] : memref<8x4xf32, #tpu.memory_space<vmem>>, vector<8x4xf32>
      %cst_41 = arith.constant dense<0.000000e+00> : vector<8x1xf32>
      %45 = tpu.matmul %44, %42, %cst_41 {dimension_numbers = #tpu.dot_dimension_numbers<[1], [0], [0], [1], [0, 0, 1, 1], [], []>} : vector<8x4xf32>, vector<4x1xf32>, vector<8x1xf32> -> vector<8x1xf32>
      %c0_42 = arith.constant 0 : index
      %c0_43 = arith.constant 0 : index
      %46 = vector.load %arg4[%c0_42, %c0_43] : memref<8x4xf32, #tpu.memory_space<vmem>>, vector<8x4xf32>
      %cst_44 = arith.constant dense<0.000000e+00> : vector<8x1xf32>
      %47 = tpu.matmul %46, %43, %cst_44 {dimension_numbers = #tpu.dot_dimension_numbers<[1], [0], [0], [1], [0, 0, 1, 1], [], []>} : vector<8x4xf32>, vector<4x1xf32>, vector<8x1xf32> -> vector<8x1xf32>
      %48 = arith.addf %45, %47 : vector<8x1xf32>
      %c0_45 = arith.constant 0 : index
      %c0_46 = arith.constant 0 : index
      %49 = vector.load %arg5[%c0_45, %c0_46] : memref<8x1xf32, #tpu.memory_space<vmem>>, vector<8x1xf32>
      %50 = arith.addf %48, %49 : vector<8x1xf32>
      %cst_47 = arith.constant 0.000000e+00 : f32
      %51 = vector.broadcast %cst_47 : f32 to vector<8x1xf32>
      %52 = arith.maximumf %50, %51 : vector<8x1xf32>
      %c0_48 = arith.constant 0 : index
      %c0_49 = arith.constant 0 : index
      %53 = vector.load %arg6[%c0_48, %c0_49] : memref<1x8xf32, #tpu.memory_space<vmem>>, vector<1x8xf32>
      %cst_50 = arith.constant dense<0.000000e+00> : vector<1x1xf32>
      %54 = tpu.matmul %53, %52, %cst_50 {dimension_numbers = #tpu.dot_dimension_numbers<[1], [0], [0], [1], [0, 0, 1, 1], [], []>} : vector<1x8xf32>, vector<8x1xf32>, vector<1x1xf32> -> vector<1x1xf32>
      %c0_51 = arith.constant 0 : index
      %c0_52 = arith.constant 0 : index
      %55 = vector.load %arg7[%c0_51, %c0_52] : memref<1x1xf32, #tpu.memory_space<vmem>>, vector<1x1xf32>
      %56 = arith.addf %54, %55 : vector<1x1xf32>
      %57 = arith.negf %56 : vector<1x1xf32>
      %58 = math.exp %57 : vector<1x1xf32>
      %cst_53 = arith.constant 1.000000e+00 : f32
      %59 = vector.broadcast %cst_53 : f32 to vector<1x1xf32>
      %60 = arith.addf %59, %58 : vector<1x1xf32>
      %61 = arith.divf %59, %60 : vector<1x1xf32>
      %c1 = arith.constant 1 : index
      %c0_54 = arith.constant 0 : index
      %62 = vector.load %arg8[%c1, %c0_54] : memref<2x1xf32, #tpu.memory_space<vmem>>, vector<1x1xf32>
      tpu.vector_store %arg8[%c1, %c0_54], %61 {strides = array<i32>} : memref<2x1xf32, #tpu.memory_space<vmem>>, vector<1x1xf32>,
    } else {
    }
    return
  }
  func.func @transform_0(%arg0: i32, %arg1: i32) -> (i32, i32) {
    %c0_i32 = arith.constant 0 : i32
    return %arg0, %arg1 : i32, i32
  }
  func.func @transform_1(%arg0: i32, %arg1: i32) -> (i32, i32) {
    %c0_i32 = arith.constant 0 : i32
    %c0_i32_0 = arith.constant 0 : i32
    %c0_i32_1 = arith.constant 0 : i32
    return %c0_i32, %c0_i32_0 : i32, i32
  }
  func.func @transform_2(%arg0: i32, %arg1: i32) -> (i32, i32) {
    %c0_i32 = arith.constant 0 : i32
    %c0_i32_0 = arith.constant 0 : i32
    %c0_i32_1 = arith.constant 0 : i32
    return %c0_i32, %c0_i32_0 : i32, i32
  }
  func.func @transform_3(%arg0: i32, %arg1: i32) -> (i32, i32) {
    %c0_i32 = arith.constant 0 : i32
    %c0_i32_0 = arith.constant 0 : i32
    %c0_i32_1 = arith.constant 0 : i32
    return %c0_i32, %c0_i32_0 : i32, i32
  }
  func.func @transform_4(%arg0: i32, %arg1: i32) -> (i32, i32) {
    %c0_i32 = arith.constant 0 : i32
    %c0_i32_0 = arith.constant 0 : i32
    %c0_i32_1 = arith.constant 0 : i32
    return %c0_i32, %c0_i32_0 : i32, i32
  }
  func.func @transform_5(%arg0: i32, %arg1: i32) -> (i32, i32) {
    %c0_i32 = arith.constant 0 : i32
    %c0_i32_0 = arith.constant 0 : i32
    %c0_i32_1 = arith.constant 0 : i32
    return %c0_i32, %c0_i32_0 : i32, i32
  }
  func.func @transform_6(%arg0: i32, %arg1: i32) -> (i32, i32) {
    %c0_i32 = arith.constant 0 : i32
    %c0_i32_0 = arith.constant 0 : i32
    return %arg0, %c0_i32 : i32, i32
  }
}

</mosaic_0001>

<bundles_post_ra>
// kernel: adaptive_threshold.1
= control target key start
LH: loop header
LB: loop body
LE: loop exit
PB: predicated region body
PF: predicated region fallthrough
CT: control target
= control target key end

     0   :  { %vm29_vm0 = vcmask 7168   ;;  %v290_v2 = vmov 0.0   ;;  %v291_v5 = vmov -inf   ;;  %vm59_vm1 = vcmask 1043456   ;;  %s367_s0 = inlined_call_operand.vmem [shape: f32[8,256], index: 0, kind: input, shape index: {}]   ;;  %s368_s1 = inlined_call_operand.vmem [shape: f32[8,4], index: 1, kind: input, shape index: {}]   ;;  %s369_s2 = inlined_call_operand.vmem [shape: f32[8,4], index: 2, kind: input, shape index: {}]   ;;  %s370_s5 = inlined_call_operand.<no memory space> [shape: f32[1,1], index: 5, kind: input, shape index: {}]   ;;  %s371_s3 = inlined_call_operand.vmem [shape: f32[8,1], index: 3, kind: input, shape index: {}]   ;;  %s372_s4 = inlined_call_operand.vmem [shape: f32[1,8], index: 4, kind: input, shape index: {}]   ;;  %s373_s6 = inlined_call_operand.vmem [shape: f32[2,1], index: 6, kind: output, shape index: {}]  }
   0x1   :  { %v32_v0 = vld [vmem:[%s367_s0] sm:$0xff]  ;;  %v33_v1 = vld [vmem:[%s367_s0 + $0x8] sm:$0xff]  ;;  %30 = vst.msk [vmem:[#allocation2] sm:$0xff] %vm29_vm0, %v290_v2  ;;  %vm55_vm2 = vcmask 31744   ;;  %v11_v20 = vstv %s370_s5  ;;  %vm114_vm3 = vcmask 64512   ;;  %vm157_vm6 = vcmask 0  }
   0x2   :  { %v35_v3 = vadd.f32 %v33_v1, %v32_v0  ;;  %v42_v4 = vmax.f32 %v32_v0, %v33_v1  ;;  %31 = vst.msk [vmem:[#allocation3] sm:$0xff] %vm29_vm0, %v291_v5  ;;  %v53_v14 = vld [vmem:[%s368_s1] sm:$0xff] }
   0x3   :  { %v54_v16 = vld [vmem:[%s369_s2] sm:$0xff]  ;;  %12 = vst [vmem:[#allocation4] sm:$0x1] %v11_v20 }
   0x4   :  { %36 = vadd.xlane.f32.xlu0 %v35_v3  ;;  %v109_v23 = vld [vmem:[%s371_s3] sm:$0xff] }
   0x5   :  { %v112_v27 = vld [vmem:[%s372_s4] sm:$0x1] }
   0x6   :  { %v219_v33 = vld [vmem:[%s372_s4] sm:$0x1] }
   0x8   :  { %v34_v6 = vld [vmem:[#allocation2] sm:$0xff] }
   0x9   :  { %v41_v9 = vld [vmem:[#allocation3] sm:$0xff] }
   0xa   :  { %v113_v34 = vld [vmem:[#allocation4] sm:$0x1] }
   0xb   :  { %v220_v36 = vld [vmem:[#allocation4] sm:$0x1] }
   0xc   :  { %43 = vmax.xlane.f32.xlu0 %v42_v4 }
  0x77   :  { %v37_v7 = vpop.xlane.xlu0 %36 }
  0x78   :  { %v38_v8 = vadd.f32 %v37_v7, %v34_v6 }
  0x7a   :  { %40 = vst.msk [vmem:[#allocation2] sm:$0xff] %vm29_vm0, %v38_v8 }
  0x7f   :  { %v44_v10 = vpop.xlane.xlu0 %43 }
  0x80   :  { %v45_v11 = vmax.f32 %v41_v9, %v44_v10 }
  0x81   :  { %v50_v12 = vld [vmem:[#allocation2] sm:$0xf]  ;;  %v159_v15 = vld [vmem:[#allocation2 + $0x4] sm:$0xf] }
  0x82   :  { %46 = vst.msk [vmem:[#allocation3] sm:$0xff] %vm29_vm0, %v45_v11  ;;  %v51_v13 = vmul.f32 0.00390625, %v50_v12  ;;  %v160_v19 = vmul.f32 0.00390625, %v159_v15 }
  0x84   :  { %270 = vmatpush.msk.msra.mxu1 %vm59_vm1, %v51_v13 }
  0x85   :  { %271 = vmatmul.msk.f32.vlgmr.msra.gmra.mxu1 %vm55_vm2, %v53_v14 }
  0x89   :  { %v52_v17 = vld [vmem:[#allocation3] sm:$0xf]  ;;  %v161_v18 = vld [vmem:[#allocation3 + $0x4] sm:$0xf] }
  0x8a   :  { %268 = vmatpush.msk.msra.mxu0 %vm59_vm1, %v52_v17  ;;  %274 = vmatpush.msk.msra.mxu3 %vm59_vm1, %v161_v18 }
  0x8b   :  { %269 = vmatmul.msk.f32.vlgmr.msra.gmra.mxu0 %vm55_vm2, %v54_v16  ;;  %275 = vmatmul.msk.f32.vlgmr.msra.gmra.mxu3 %vm55_vm2, %v54_v16 }
  0x8c   :  { %276 = vmatpush.msk.msrb.mxu0 %vm59_vm1, %v160_v19 }
  0x93   :  { %277 = vmatmul.msk.f32.vlgmr.msrb.gmra.mxu0 %vm55_vm2, %v53_v14 }
 0x102   :  { %v106_v21 = vpop.f32.mrf.mxu1 }
 0x108   :  { %v80_v22 = vpop.f32.mrf.mxu0 }
 0x109   :  { %v107_v24 = vadd.f32 %v106_v21, %v80_v22 }
 0x10b   :  { %v110_v25 = vadd.f32 %v109_v23, %v107_v24 }
 0x10d   :  { %v111_v26 = vmax.f32 %v110_v25, 0.0 }
 0x10e   :  { %v187_v28 = vpop.f32.mrf.mxu3 }
 0x10f   :  { %133 = vmatpush.msra.mxu2 %v111_v26 }
 0x110   :  { %272 = vmatmul.msk.f32.vlgmr.msra.gmra.mxu2 %vm114_vm3, %v112_v27  ;;  %v213_v29 = vpop.f32.mrf.mxu0 }
 0x111   :  { %v214_v30 = vadd.f32 %v213_v29, %v187_v28 }
 0x113   :  { %v217_v31 = vadd.f32 %v214_v30, %v109_v23 }
 0x115   :  { %v218_v32 = vmax.f32 %v217_v31, 0.0 }
 0x117   :  { %239 = vmatpush.msrb.mxu1 %v218_v32 }
 0x118   :  { %278 = vmatmul.msk.f32.vlgmr.msrb.gmra.mxu1 %vm114_vm3, %v219_v33 }
 0x193   :  { %v135_v35 = vpop.f32.mrf.mxu2 }
 0x194   :  { %v136_v37 = vadd.f32 %v135_v35, %v113_v34 }
 0x195   :  { %v241_v38 = vpop.f32.mrf.mxu1 }
 0x196   :  { %v273_v39 = vmul.f32 -1.442695, %v136_v37  ;;  %v242_v40 = vadd.f32 %v241_v38, %v220_v36 }
 0x198   :  { %282 = vpow2.f32 %v273_v39  ;;  %v279_v41 = vmul.f32 -1.442695, %v242_v40 }
 0x19a   :  { %284 = vpow2.f32 %v279_v41 }
 0x19e   :  { %v283_v42 = vpop.eup %282 }
 0x19f   :  { %v141_v43 = vadd.f32 1.0, %v283_v42 }
 0x1a0   :  { %v285_v44 = vpop.eup %284 }
 0x1a1   :  { %286 = vrcp.f32 %v141_v43  ;;  %v247_v45 = vadd.f32 1.0, %v285_v44  ;;  %v153_v50 = vand.u32 2147483648, %v141_v43  ;;  %v151_v53 = vand.u32 2147483647, %v141_v43 }
 0x1a2   :  { %vm147_vm5 = vweird.f32 %v141_v43 }
 0x1a3   :  { %288 = vrcp.f32 %v247_v45  ;;  %v259_v56 = vand.u32 2147483648, %v247_v45  ;;  %v154_v57 = vor.u32 1.1754944e-38, %v153_v50  ;;  %v257_v59 = vand.u32 2147483647, %v247_v45 }
 0x1a4   :  { %vm152_vm9 = vcmp.eq.f32.partialorder %v151_v53, 8.507059e+37  ;;  %vm253_vm10 = vweird.f32 %v247_v45 }
 0x1a5   :  { %v260_v63 = vor.u32 1.1754944e-38, %v259_v56  ;;  %vm258_vm12 = vcmp.eq.f32.partialorder %v257_v59, 8.507059e+37 }
 0x1a7   :  { %v287_v46 = vpop.eup %286 }
 0x1a8   :  { %v143_v47 = vmul.f32 %v287_v46, %v141_v43  ;;  %vm148_vm4 = vweird.f32 %v287_v46 }
 0x1a9   :  { %v289_v48 = vpop.eup %288  ;;  %vm149_vm7 = vmor %vm147_vm5, %vm148_vm4 }
 0x1aa   :  { %v144_v49 = vsub.f32 1.0, %v143_v47  ;;  %v249_v51 = vmul.f32 %v289_v48, %v247_v45  ;;  %vm254_vm8 = vweird.f32 %v289_v48 }
 0x1ab   :  { %vm255_vm11 = vmor %vm253_vm10, %vm254_vm8 }
 0x1ac   :  { %v145_v52 = vmul.f32 %v287_v46, %v144_v49  ;;  %v250_v54 = vsub.f32 1.0, %v249_v51 }
 0x1ae   :  { %v146_v55 = vadd.f32 %v287_v46, %v145_v52  ;;  %v251_v58 = vmul.f32 %v289_v48, %v250_v54 }
 0x1b0   :  { %v150_v60 = vsel %vm149_vm7, %v287_v46, %v146_v55  ;;  %v252_v62 = vadd.f32 %v289_v48, %v251_v58 }
 0x1b1   :  { %v155_v61 = vsel %vm152_vm9, %v154_v57, %v150_v60 }
 0x1b2   :  { %158 = vst.msk [vmem:[%s373_s6] sm:$0x1] %vm157_vm6, %v155_v61  ;;  %v256_v0 = vsel %vm255_vm11, %v289_v48, %v252_v62 }
 0x1b3   :  { %v261_v1 = vsel %vm258_vm12, %v260_v63, %v256_v0 }
 0x1b4   :  { %263 = vst.msk [vmem:[%s373_s6 + $0x1] sm:$0x1] %vm157_vm6, %v261_v1 }

</bundles_post_ra>
